<compile_context>
chip_gen: v6e
topology: v6e:2x2x1
jax: 0.10.0
libtpu: 0.0.40
codegen_flags: <defaults>
</compile_context>

<pallas_src>
import functools

import jax
import jax.numpy as jnp
from jax.experimental import pallas as pl
from jax.experimental.pallas import tpu as pltpu

_COMPUTE_DTYPE = jnp.bfloat16  # MXU operand dtype; accumulation stays f32.


def _mlp_kernel(x_ref,
                w1_ref, b1_ref,
                w2_ref, b2_ref,
                w3_ref, b3_ref,
                w4_ref, b4_ref,
                w5_ref, b5_ref,
                o_ref):
    """Fused forward pass for one (features, batch_tile) activation tile."""

    def hidden(h, w_ref, b_ref):
        # (out, in) @ (in, tile) -> (out, tile); bf16 operands, f32 accumulate.
        z = jnp.dot(w_ref[...], h.astype(_COMPUTE_DTYPE),
                    preferred_element_type=jnp.float32)
        z = z + b_ref[...]                    # bias (out, 1) broadcasts over lanes
        return jnp.maximum(z, 0.0)            # keep activations f32 between layers

    h = x_ref[...]                            # (in_size, tile), bf16
    h = hidden(h, w1_ref, b1_ref)
    h = hidden(h, w2_ref, b2_ref)
    h = hidden(h, w3_ref, b3_ref)
    h = hidden(h, w4_ref, b4_ref)             # (8, tile), f32

    # layer_5 (8 -> 1) on the VPU/XLU: broadcast-mul + sublane reduce.
    z = jnp.sum(h * w5_ref[...], axis=0, keepdims=True)
    z = z + b5_ref[...]                       # (1, tile), f32

    # sigmoid: exp + reciprocal both land on the EUP slot.
    o_ref[...] = pl.reciprocal(1.0 + jnp.exp(-z), approx=True).astype(o_ref.dtype)


@functools.partial(jax.jit, static_argnames=("batch_tile",))
def ann_forward(x, params, *, batch_tile=256):
    """x: (B, input_size) f32.  params: 5 (W (out,in), b (out,)) pairs (PyTorch layout)."""
    assert batch_tile % 128 == 0, "batch_tile must be a multiple of 128"
    B, in_size = x.shape
    n_tiles = pl.cdiv(B, batch_tile)
    b_pad = n_tiles * batch_tile

    # Transpose to (features, batch) so batch sits on the lane axis; pad the
    # batch up to a multiple of batch_tile (padded columns are sliced away).
    x_t = jnp.pad(x.T.astype(_COMPUTE_DTYPE), ((0, 0), (0, b_pad - B)))

    flat = []
    in_specs = [pl.BlockSpec((in_size, batch_tile), lambda i: (0, i))]

    # Hidden layers 1..4: bf16 weights (out, in), f32 bias columns (out, 1).
    # Whole-array blocks, identical for every grid step (VMEM-resident).
    for (w, b) in params[:-1]:
        flat += [w.astype(_COMPUTE_DTYPE), b.astype(jnp.float32).reshape(-1, 1)]
        in_specs += [pl.BlockSpec(w.shape, lambda i: (0, 0)),
                     pl.BlockSpec((w.shape[0], 1), lambda i: (0, 0))]

    # layer_5 stays f32 and runs on the VPU: weight stored as an (in, 1) column.
    w5, b5 = params[-1]
    flat += [w5.T.astype(jnp.float32), b5.astype(jnp.float32).reshape(1, 1)]
    in_specs += [pl.BlockSpec((w5.shape[1], 1), lambda i: (0, 0)),
                 pl.BlockSpec((1, 1), lambda i: (0, 0))]

    out = pl.pallas_call(
        _mlp_kernel,
        out_shape=jax.ShapeDtypeStruct((1, b_pad), jnp.float32),
        grid=(n_tiles,),
        in_specs=in_specs,
        out_specs=pl.BlockSpec((1, batch_tile), lambda i: (0, i)),
        compiler_params=pltpu.CompilerParams(
            dimension_semantics=("parallel",)),
    )(x_t, *flat)

    # Back to the PyTorch-facing (B, 1) layout.
    return out[0, :B].reshape(B, 1)


def init_linear(key, in_features, out_features):
    """torch.nn.Linear-style init; returns W (out, in) and b (out,)."""
    kw, kb = jax.random.split(key)
    bound = 1.0 / jnp.sqrt(jnp.float32(in_features))
    w = jax.random.uniform(kw, (out_features, in_features), jnp.float32,
                           minval=-bound, maxval=bound)
    b = jax.random.uniform(kb, (out_features,), jnp.float32,
                           minval=-bound, maxval=bound)
    return w, b


def reference_forward(x, params):
    """Pure-JAX reference using the same bf16-operand / f32-accumulate recipe."""
    h = x
    for (w, b) in params[:-1]:
        z = jnp.dot(h.astype(_COMPUTE_DTYPE), w.T.astype(_COMPUTE_DTYPE),
                    preferred_element_type=jnp.float32) + b[None, :]
        h = jnp.maximum(z, 0.0)
    w, b = params[-1]
    z = jnp.dot(h, w.T.astype(jnp.float32)) + b[None, :]
    return jax.nn.sigmoid(z)


if __name__ == "__main__":
    # ANN(input_size=16, layer1=32, layer2=32, layer3=16, layer4=8) -> 1 output.
    # Small, deterministic test case; B is deliberately NOT a multiple of the
    # batch tile so the padding path is exercised (grid of 2 steps with
    # batch_tile=128).
    B = 200
    sizes = [16, 32, 32, 16, 8, 1]

    key = jax.random.PRNGKey(0)
    keys = jax.random.split(key, len(sizes))  # last key used for x

    params = []
    for li in range(len(sizes) - 1):
        params.append(init_linear(keys[li], sizes[li], sizes[li + 1]))

    x = jax.random.normal(keys[-1], (B, sizes[0]), jnp.float32)

    y = ann_forward(x, params, batch_tile=128)
    y = jax.block_until_ready(y)

    y_ref = reference_forward(x, params)
    assert y.shape == (B, 1)
    max_err = float(jnp.max(jnp.abs(y - y_ref)))
    assert jnp.allclose(y, y_ref, atol=2e-3, rtol=2e-3), (
        f"mismatch vs JAX reference: max|delta|={max_err}")

    print("KERNEL_OK")
</pallas_src>

<mosaic_0001>
module attributes {stable_mosaic.version = 11 : i64} {
  func.func @_mlp_kernel(%arg0: i32, %arg1: memref<16x128xbf16, #tpu.memory_space<vmem>>, %arg2: memref<32x16xbf16, #tpu.memory_space<vmem>>, %arg3: memref<32x1xf32, #tpu.memory_space<vmem>>, %arg4: memref<32x32xbf16, #tpu.memory_space<vmem>>, %arg5: memref<32x1xf32, #tpu.memory_space<vmem>>, %arg6: memref<16x32xbf16, #tpu.memory_space<vmem>>, %arg7: memref<16x1xf32, #tpu.memory_space<vmem>>, %arg8: memref<8x16xbf16, #tpu.memory_space<vmem>>, %arg9: memref<8x1xf32, #tpu.memory_space<vmem>>, %arg10: memref<8x1xf32, #tpu.memory_space<vmem>>, %arg11: memref<1x1xf32, #tpu.memory_space<vmem>>, %arg12: memref<1x128xf32, #tpu.memory_space<vmem>>) attributes {dimension_semantics = [#tpu.dimension_semantics<parallel>], iteration_bounds = array<i64: 2>, scalar_prefetch = 0 : i64, scratch_operands = 0 : i64, tpu.core_type = #tpu.core_type<tc>, window_params = [{transform_indices = @transform_0, window_bounds = array<i64: 16, 128>}, {pipeline_mode = #tpu.pipeline_mode<synchronous>, transform_indices = @transform_1, window_bounds = array<i64: 32, 16>}, {pipeline_mode = #tpu.pipeline_mode<synchronous>, transform_indices = @transform_2, window_bounds = array<i64: 32, 1>}, {pipeline_mode = #tpu.pipeline_mode<synchronous>, transform_indices = @transform_3, window_bounds = array<i64: 32, 32>}, {pipeline_mode = #tpu.pipeline_mode<synchronous>, transform_indices = @transform_4, window_bounds = array<i64: 32, 1>}, {pipeline_mode = #tpu.pipeline_mode<synchronous>, transform_indices = @transform_5, window_bounds = array<i64: 16, 32>}, {pipeline_mode = #tpu.pipeline_mode<synchronous>, transform_indices = @transform_6, window_bounds = array<i64: 16, 1>}, {pipeline_mode = #tpu.pipeline_mode<synchronous>, transform_indices = @transform_7, window_bounds = array<i64: 8, 16>}, {pipeline_mode = #tpu.pipeline_mode<synchronous>, transform_indices = @transform_8, window_bounds = array<i64: 8, 1>}, {pipeline_mode = #tpu.pipeline_mode<synchronous>, transform_indices = @transform_9, window_bounds = array<i64: 8, 1>}, {pipeline_mode = #tpu.pipeline_mode<synchronous>, transform_indices = @transform_10, window_bounds = array<i64: 1, 1>}, {transform_indices = @transform_11, window_bounds = array<i64: 1, 128>}]} {
    %c0 = arith.constant 0 : index
    %c0_0 = arith.constant 0 : index
    %0 = vector.load %arg1[%c0, %c0_0] : memref<16x128xbf16, #tpu.memory_space<vmem>>, vector<16x128xbf16>
    %c0_1 = arith.constant 0 : index
    %c0_2 = arith.constant 0 : index
    %1 = vector.load %arg2[%c0_1, %c0_2] : memref<32x16xbf16, #tpu.memory_space<vmem>>, vector<32x16xbf16>
    %cst = arith.constant dense<0.000000e+00> : vector<32x128xf32>
    %2 = tpu.matmul %1, %0, %cst {dimension_numbers = #tpu.dot_dimension_numbers<[1], [0], [0], [1], [0, 0, 1, 1], [], []>} : vector<32x16xbf16>, vector<16x128xbf16>, vector<32x128xf32> -> vector<32x128xf32>
    %c0_3 = arith.constant 0 : index
    %c0_4 = arith.constant 0 : index
    %3 = vector.load %arg3[%c0_3, %c0_4] : memref<32x1xf32, #tpu.memory_space<vmem>>, vector<32x1xf32>
    %4 = vector.broadcast %3 : vector<32x1xf32> to vector<32x128xf32>
    %5 = arith.addf %2, %4 : vector<32x128xf32>
    %cst_5 = arith.constant 0.000000e+00 : f32
    %6 = vector.broadcast %cst_5 : f32 to vector<32x128xf32>
    %7 = arith.maximumf %5, %6 : vector<32x128xf32>
    %c0_6 = arith.constant 0 : index
    %c0_7 = arith.constant 0 : index
    %8 = vector.load %arg4[%c0_6, %c0_7] : memref<32x32xbf16, #tpu.memory_space<vmem>>, vector<32x32xbf16>
    %9 = arith.truncf %7 : vector<32x128xf32> to vector<32x128xbf16>
    %cst_8 = arith.constant dense<0.000000e+00> : vector<32x128xf32>
    %10 = tpu.matmul %8, %9, %cst_8 {dimension_numbers = #tpu.dot_dimension_numbers<[1], [0], [0], [1], [0, 0, 1, 1], [], []>} : vector<32x32xbf16>, vector<32x128xbf16>, vector<32x128xf32> -> vector<32x128xf32>
    %c0_9 = arith.constant 0 : index
    %c0_10 = arith.constant 0 : index
    %11 = vector.load %arg5[%c0_9, %c0_10] : memref<32x1xf32, #tpu.memory_space<vmem>>, vector<32x1xf32>
    %12 = vector.broadcast %11 : vector<32x1xf32> to vector<32x128xf32>
    %13 = arith.addf %10, %12 : vector<32x128xf32>
    %cst_11 = arith.constant 0.000000e+00 : f32
    %14 = vector.broadcast %cst_11 : f32 to vector<32x128xf32>
    %15 = arith.maximumf %13, %14 : vector<32x128xf32>
    %c0_12 = arith.constant 0 : index
    %c0_13 = arith.constant 0 : index
    %16 = vector.load %arg6[%c0_12, %c0_13] : memref<16x32xbf16, #tpu.memory_space<vmem>>, vector<16x32xbf16>
    %17 = arith.truncf %15 : vector<32x128xf32> to vector<32x128xbf16>
    %cst_14 = arith.constant dense<0.000000e+00> : vector<16x128xf32>
    %18 = tpu.matmul %16, %17, %cst_14 {dimension_numbers = #tpu.dot_dimension_numbers<[1], [0], [0], [1], [0, 0, 1, 1], [], []>} : vector<16x32xbf16>, vector<32x128xbf16>, vector<16x128xf32> -> vector<16x128xf32>
    %c0_15 = arith.constant 0 : index
    %c0_16 = arith.constant 0 : index
    %19 = vector.load %arg7[%c0_15, %c0_16] : memref<16x1xf32, #tpu.memory_space<vmem>>, vector<16x1xf32>
    %20 = vector.broadcast %19 : vector<16x1xf32> to vector<16x128xf32>
    %21 = arith.addf %18, %20 : vector<16x128xf32>
    %cst_17 = arith.constant 0.000000e+00 : f32
    %22 = vector.broadcast %cst_17 : f32 to vector<16x128xf32>
    %23 = arith.maximumf %21, %22 : vector<16x128xf32>
    %c0_18 = arith.constant 0 : index
    %c0_19 = arith.constant 0 : index
    %24 = vector.load %arg8[%c0_18, %c0_19] : memref<8x16xbf16, #tpu.memory_space<vmem>>, vector<8x16xbf16>
    %25 = arith.truncf %23 : vector<16x128xf32> to vector<16x128xbf16>
    %cst_20 = arith.constant dense<0.000000e+00> : vector<8x128xf32>
    %26 = tpu.matmul %24, %25, %cst_20 {dimension_numbers = #tpu.dot_dimension_numbers<[1], [0], [0], [1], [0, 0, 1, 1], [], []>} : vector<8x16xbf16>, vector<16x128xbf16>, vector<8x128xf32> -> vector<8x128xf32>
    %c0_21 = arith.constant 0 : index
    %c0_22 = arith.constant 0 : index
    %27 = vector.load %arg9[%c0_21, %c0_22] : memref<8x1xf32, #tpu.memory_space<vmem>>, vector<8x1xf32>
    %28 = vector.broadcast %27 : vector<8x1xf32> to vector<8x128xf32>
    %29 = arith.addf %26, %28 : vector<8x128xf32>
    %cst_23 = arith.constant 0.000000e+00 : f32
    %30 = vector.broadcast %cst_23 : f32 to vector<8x128xf32>
    %31 = arith.maximumf %29, %30 : vector<8x128xf32>
    %c0_24 = arith.constant 0 : index
    %c0_25 = arith.constant 0 : index
    %32 = vector.load %arg10[%c0_24, %c0_25] : memref<8x1xf32, #tpu.memory_space<vmem>>, vector<8x1xf32>
    %33 = vector.broadcast %32 : vector<8x1xf32> to vector<8x128xf32>
    %34 = arith.mulf %31, %33 : vector<8x128xf32>
    %cst_26 = arith.constant dense<0.000000e+00> : vector<128xf32>
    %35 = vector.multi_reduction <add>, %34, %cst_26 [0] : vector<8x128xf32> to vector<128xf32>
    %36 = vector.shape_cast %35 : vector<128xf32> to vector<1x128xf32>
    %c0_27 = arith.constant 0 : index
    %c0_28 = arith.constant 0 : index
    %37 = vector.load %arg11[%c0_27, %c0_28] : memref<1x1xf32, #tpu.memory_space<vmem>>, vector<1x1xf32>
    %38 = vector.broadcast %37 : vector<1x1xf32> to vector<1x128xf32>
    %39 = arith.addf %36, %38 : vector<1x128xf32>
    %cst_29 = arith.constant 0.000000e+00 : f32
    %40 = vector.broadcast %cst_29 : f32 to vector<1x128xf32>
    %41 = arith.subf %40, %39 : vector<1x128xf32>
    %42 = math.exp %41 : vector<1x128xf32>
    %cst_30 = arith.constant 1.000000e+00 : f32
    %43 = vector.broadcast %cst_30 : f32 to vector<1x128xf32>
    %44 = arith.addf %43, %42 : vector<1x128xf32>
    %45 = tpu.reciprocal %44 {approx = true} : vector<1x128xf32> -> vector<1x128xf32>
    %c0_31 = arith.constant 0 : index
    %c0_32 = arith.constant 0 : index
    %46 = vector.load %arg12[%c0_31, %c0_32] : memref<1x128xf32, #tpu.memory_space<vmem>>, vector<1x128xf32>
    tpu.vector_store %arg12[%c0_31, %c0_32], %45 {strides = array<i32>} : memref<1x128xf32, #tpu.memory_space<vmem>>, vector<1x128xf32>,
    return
  }
  func.func @transform_0(%arg0: i32) -> (i32, i32) {
    %c0_i32 = arith.constant 0 : i32
    %c0_i32_0 = arith.constant 0 : i32
    return %c0_i32, %arg0 : i32, i32
  }
  func.func @transform_1(%arg0: i32) -> (i32, i32) {
    %c0_i32 = arith.constant 0 : i32
    %c0_i32_0 = arith.constant 0 : i32
    %c0_i32_1 = arith.constant 0 : i32
    return %c0_i32, %c0_i32_0 : i32, i32
  }
  func.func @transform_2(%arg0: i32) -> (i32, i32) {
    %c0_i32 = arith.constant 0 : i32
    %c0_i32_0 = arith.constant 0 : i32
    %c0_i32_1 = arith.constant 0 : i32
    return %c0_i32, %c0_i32_0 : i32, i32
  }
  func.func @transform_3(%arg0: i32) -> (i32, i32) {
    %c0_i32 = arith.constant 0 : i32
    %c0_i32_0 = arith.constant 0 : i32
    %c0_i32_1 = arith.constant 0 : i32
    return %c0_i32, %c0_i32_0 : i32, i32
  }
  func.func @transform_4(%arg0: i32) -> (i32, i32) {
    %c0_i32 = arith.constant 0 : i32
    %c0_i32_0 = arith.constant 0 : i32
    %c0_i32_1 = arith.constant 0 : i32
    return %c0_i32, %c0_i32_0 : i32, i32
  }
  func.func @transform_5(%arg0: i32) -> (i32, i32) {
    %c0_i32 = arith.constant 0 : i32
    %c0_i32_0 = arith.constant 0 : i32
    %c0_i32_1 = arith.constant 0 : i32
    return %c0_i32, %c0_i32_0 : i32, i32
  }
  func.func @transform_6(%arg0: i32) -> (i32, i32) {
    %c0_i32 = arith.constant 0 : i32
    %c0_i32_0 = arith.constant 0 : i32
    %c0_i32_1 = arith.constant 0 : i32
    return %c0_i32, %c0_i32_0 : i32, i32
  }
  func.func @transform_7(%arg0: i32) -> (i32, i32) {
    %c0_i32 = arith.constant 0 : i32
    %c0_i32_0 = arith.constant 0 : i32
    %c0_i32_1 = arith.constant 0 : i32
    return %c0_i32, %c0_i32_0 : i32, i32
  }
  func.func @transform_8(%arg0: i32) -> (i32, i32) {
    %c0_i32 = arith.constant 0 : i32
    %c0_i32_0 = arith.constant 0 : i32
    %c0_i32_1 = arith.constant 0 : i32
    return %c0_i32, %c0_i32_0 : i32, i32
  }
  func.func @transform_9(%arg0: i32) -> (i32, i32) {
    %c0_i32 = arith.constant 0 : i32
    %c0_i32_0 = arith.constant 0 : i32
    %c0_i32_1 = arith.constant 0 : i32
    return %c0_i32, %c0_i32_0 : i32, i32
  }
  func.func @transform_10(%arg0: i32) -> (i32, i32) {
    %c0_i32 = arith.constant 0 : i32
    %c0_i32_0 = arith.constant 0 : i32
    %c0_i32_1 = arith.constant 0 : i32
    return %c0_i32, %c0_i32_0 : i32, i32
  }
  func.func @transform_11(%arg0: i32) -> (i32, i32) {
    %c0_i32 = arith.constant 0 : i32
    %c0_i32_0 = arith.constant 0 : i32
    return %c0_i32, %arg0 : i32, i32
  }
}

</mosaic_0001>

<bundles_post_ra>
// kernel: ann_forward.1
= control target key start
LH: loop header
LB: loop body
LE: loop exit
PB: predicated region body
PF: predicated region fallthrough
CT: control target
= control target key end

     0   :  { %s1146_s0 = inlined_call_operand.vmem [shape: bf16[16,256], index: 0, kind: input, shape index: {}]   ;;  %s1147_s1 = inlined_call_operand.vmem [shape: bf16[32,16], index: 1, kind: input, shape index: {}]   ;;  %s1148_s2 = inlined_call_operand.vmem [shape: f32[32,1], index: 2, kind: input, shape index: {}]   ;;  %s1149_s3 = inlined_call_operand.vmem [shape: bf16[32,32], index: 3, kind: input, shape index: {}]   ;;  %s1150_s4 = inlined_call_operand.vmem [shape: f32[32,1], index: 4, kind: input, shape index: {}]   ;;  %s1151_s5 = inlined_call_operand.vmem [shape: bf16[16,32], index: 5, kind: input, shape index: {}]   ;;  %s1152_s6 = inlined_call_operand.vmem [shape: f32[16,1], index: 6, kind: input, shape index: {}]   ;;  %s1153_s7 = inlined_call_operand.vmem [shape: bf16[8,16], index: 7, kind: input, shape index: {}]   ;;  %s1154_s8 = inlined_call_operand.vmem [shape: f32[8,1], index: 8, kind: input, shape index: {}]   ;;  %s1155_s9 = inlined_call_operand.vmem [shape: f32[8,1], index: 9, kind: input, shape index: {}]   ;;  %s1156_s10 = inlined_call_operand.<no memory space> [shape: f32[1,1], index: 10, kind: input, shape index: {}]   ;;  %s1157_s11 = inlined_call_operand.vmem [shape: f32[1,256], index: 11, kind: output, shape index: {}]  }
   0x1   :  { %v16_v0 = vstv %s1156_s10 }
   0x2   :  { %17 = vst [vmem:[#allocation2] sm:$0x1] %v16_v0 }
   0x3   :  { %s1032_s19 = smov 0   ;;  %s1034_s20 = smov 0  }
   0x4   :  { %s1036_s21 = smov 0  }
   0x5 LB: > { %s841_s10 = sadd.s32 4294967295, %s964_s21   ;;  %s1049_s22 = sadd.s32 1, %s964_s21   ;;  %s964_s21 = sphi %s1036_s21, %s1160_s21   ;;  %s960_s20 = sphi %s1034_s20, %s1159_s20   ;;  %s956_s19 = sphi %s1032_s19, %s1158_s19  }
   0x6   : > { %s27_s23 = ssub.s32 %s964_s21, %s1049_s22  ;;  %s30_s24 = sadd.s32 1, %s960_s20 }
   0x7   : > { %p28_p0 = scmp.eq.s32.totalorder %s27_s23, 0  ;;  %p37_p1 = scmp.ne.s32.totalorder %s960_s20, %s956_s19 }
   0x8   : > { %p38_p2 = scmp.eq.s32.totalorder %s964_s21, 0  ;;  %p844_p4 = scmp.ge.s32.totalorder %s964_s21, 2 }
   0x9   : > { %s1058_s25 = scalar_select %p28_p0, %s960_s20, %s30_s24  }
   0xa   : > { %p39_p3 = por %p38_p2, %p37_p1  ;;  %329 = sbr.rel (%p844_p4) target bundleno = 20 (0x14), region = 56 }
   0xf   : > { %332 = sbr.rel (!%p39_p3) target bundleno = 20 (0x14), region = 60  ;;  %s334_s26 = sand.u32 (%p39_p3), 1, %s960_s20  }
  0x10   : > { %s846_s27 = sshll.u32 (%p39_p3), %s964_s21, 2  ;;  %s845_s28 = sshll.u32 (%p39_p3), %s334_s26, 3 }
  0x11   : > { %s338_s12 = scalar_lea.vmem (%p39_p3), %s1146_s0, %s846_s27  ;;  %s336_s13 = scalar_lea.vmem (%p39_p3), [#allocation3], %s845_s28 }
  0x12   : > { %v355_v1 = vld [vmem:[%s338_s12] sm:$0xf] (%p39_p3)  ;;  %v357_v2 = vld [vmem:[%s338_s12 + $0x8] sm:$0xf] (%p39_p3) }
  0x13   : > { %356 = vst [vmem:[%s336_s13] sm:$0xf] (%p39_p3), %v355_v1  ;;  %358 = vst [vmem:[%s336_s13 + $0x4] sm:$0xf] (%p39_p3), %v357_v2 }
  0x14 PF: > { %p847_p5 = scmp.ge.s32.totalorder %s964_s21, 1  ;;  %p385_p6 = scmp.lt.s32.totalorder %s964_s21, 3 }
  0x16   : > { %p386_p7 = pnand %p847_p5, %p385_p6 }
  0x17   : > { %s392_s14 = sand.u32 (!%p386_p7), 1, %s956_s19   ;;  %p429_p8 = scmp.lt.s32.totalorder (!%p386_p7), %s841_s10, 1 }
  0x18   : > { %389 = sbr.rel (%p386_p7) target bundleno = 911 (0x38f), region = 101  ;;  %s848_s17 = sshll.u32 (!%p386_p7), %s392_s14, 3 }
  0x19   : > { %s394_s24 = scalar_lea.vmem (!%p386_p7), [#allocation3], %s848_s17 }
  0x1d   : > { %v933_v3 = vld [vmem:[%s1147_s1] sm:$0xff]   ;;  %vm479_vm0 = vcmask 130048   ;;  %v441_v4 = vld [vmem:[%s1148_s2 + $0x10] sm:$0xff]  ;;  %v966_v6 = vmov 0   ;;  %v934_v8 = vld [vmem:[%s1147_s1 + $0x8] sm:$0xff]   ;;  %vm579_vm1 = vcmask 261120  }
  0x1e   : > { %877 = vmatprep.mubr.msk.bf16.mxu0 %vm479_vm0, %v933_v3  ;;  %v932_v5 = vld [vmem:[%s394_s24] sm:$0xff]   ;;  %930 = vset.pattern.permute.xlu0 %v966_v6  ;;  %v442_v9 = vld [vmem:[%s1148_s2 + $0x18] sm:$0xff]  ;;  %v771_v19 = vld [vmem:[#allocation2] sm:$0x1]  ;;  %v967_v40 = vmov 0.0   ;;  %vm968_vm2 = vmmov 0  }
  0x1f   : > { %931 = vset.pattern.permute.xlu1 %v966_v6  ;;  %455 = vperm.xlu0 %930, %v441_v4   ;;  %v439_v7 = vld [vmem:[%s1148_s2] sm:$0xff]  ;;  %v440_v10 = vld [vmem:[%s1148_s2 + $0x8] sm:$0xff]  ;;  %v547_v11 = vld [vmem:[%s1150_s4 + $0x10] sm:$0xff]  ;;  %s1162_s10 = smov (!%p429_p8, %s841_s10), 1 }
  0x20   : > { %875 = vmatprep.subr.bf16.mxu0 %v932_v5  ;;  %445 = vperm.xlu1 %931, %v439_v7   ;;  %v548_v12 = vld [vmem:[%s1150_s4 + $0x18] sm:$0xff]  ;;  %v545_v13 = vld [vmem:[%s1150_s4] sm:$0xff]  ;;  %v546_v14 = vld [vmem:[%s1150_s4 + $0x8] sm:$0xff]  ;;  %s431_s29 = scalar_lea.vmem %s1157_s11, %s1162_s10 }
  0x21   : > { %876 = vmatpush3.bf16.msra.mxu0 %v932_v5  ;;  %v643_v15 = vld [vmem:[%s1152_s6] sm:$0xff]  ;;  %v644_v16 = vld [vmem:[%s1152_s6 + $0x8] sm:$0xff] }
  0x22   : > { %v708_v17 = vld [vmem:[%s1154_s8] sm:$0xff]  ;;  %v936_v39 = vld [vmem:[%s1149_s3 + $0x8] sm:$0xff]   ;;  %889 = vmatprep.subr.bf16.mxu0 %v967_v40 }
  0x23   : > { %460 = vperm.xlu0 %930, %v442_v9   ;;  %v758_v18 = vld [vmem:[%s1155_s9] sm:$0xff] }
  0x24   : > { %878 = vmatmul.mubr.msk.bf16.vlgmr.msra.gmra.mxu0 %vm479_vm0, %v934_v8  ;;  %450 = vperm.xlu1 %931, %v440_v10   ;;  %v935_v20 = vld [vmem:[%s1149_s3] sm:$0xff]  }
  0x25   : > { %885 = vmatprep.mubr.msk.bf16.mxu1 %vm579_vm1, %v935_v20  ;;  %893 = vmatprep.mubr.msk.bf16.mxu0 %vm968_vm2, %v967_v40  ;;  %v937_v59 = vld [vmem:[%s1151_s5] sm:$0xff]  }
  0x26   : > { %v706_v7 = vld [vmem:[%s1153_s7] sm:$0xf] }
  0x27   : > { %561 = vperm.xlu0 %930, %v547_v11  }
  0x28   : > { %566 = vperm.xlu1 %931, %v548_v12  }
  0x2b   : > { %551 = vperm.xlu0 %930, %v545_v13  }
  0x2c   : > { %556 = vperm.xlu1 %931, %v546_v14  }
  0x2f   : > { %647 = vperm.xlu0 %930, %v643_v15   ;;  %v777_v15 = vlaneseq }
  0x30   : > { %652 = vperm.xlu1 %931, %v644_v16  }
  0x33   : > { %711 = vperm.xlu0 %930, %v708_v17  }
  0x34   : > { %761 = vperm.xlu1 %931, %v758_v18  }
  0x37   : > { %774 = vperm.xlu0 %930, %v771_v19   ;;  %v778_v19 = vshrl.u32 %v777_v15, 7 }
  0x9a   : > { %v456_v21 = vpop.permute.xlu0 %455 }
  0x9b   : > { %v446_v22 = vpop.permute.xlu1 %445 }
  0x9e   : > { %v461_v26 = vpop.permute.xlu0 %460 }
  0x9f   : > { %v451_v30 = vpop.permute.xlu1 %450 }
  0xa2   : > { %v562_v41 = vpop.permute.xlu0 %561 }
  0xa3   : > { %v567_v42 = vpop.permute.xlu1 %566 }
  0xa6   : > { %v552_v47 = vpop.permute.xlu0 %551 }
  0xa7   : > { %v557_v49 = vpop.permute.xlu1 %556 }
  0xaa   : > { %v648_v61 = vpop.permute.xlu0 %647 }
  0xab   : > { %v653_v0 = vpop.permute.xlu1 %652 }
  0xae   : > { %v712_v8 = vpop.permute.xlu0 %711 }
  0xaf   : > { %v762_v13 = vpop.permute.xlu1 %761 }
  0xe4   : > { %v879_v23 = vpop.f32.mrf.mxu0 }
  0xe5   : > { %v529_v25 = vadd.f32 %v879_v23, %v456_v21 }
  0xe6   : > { %v520_v24 = vpop.f32.mrf.mxu0 }
  0xe7   : > { %v521_v28 = vadd.f32 %v520_v24, %v446_v22  ;;  %v537_v32 = vmax.f32 %v529_v25, 0.0  ;;  %v779_v22 = vsub.s32 0, %v778_v19  ;;  %v775_v24 = vpop.permute.xlu0 %774 }
  0xe8   : > { %v880_v27 = vpop.f32.mrf.mxu0 }
  0xe9   : > { %v532_v29 = vadd.f32 %v880_v27, %v461_v26  ;;  %v535_v35 = vmax.f32 %v521_v28, 0.0  ;;  %v780_v26 = vrot.slane %v775_v24, %v779_v22 }
  0xea   : > { %v523_v31 = vpop.f32.mrf.mxu0 }
  0xeb   : > { %v538_v33 = vmax.f32 %v532_v29, 0.0  ;;  %v524_v34 = vadd.f32 %v523_v31, %v451_v30 }
  0xed   : > { %v536_v36 = vmax.f32 %v524_v34, 0.0  ;;  %v544_v37 = vpack.c.bf16 %v538_v33, %v537_v32 }
  0xef   : > { %v543_v38 = vpack.c.bf16 %v536_v36, %v535_v35  ;;  %881 = vmatprep.subr.bf16.mxu1 %v544_v37 }
  0xf0   : > { %882 = vmatpush3.bf16.msra.mxu1 %v544_v37 }
  0xf1   : > { %883 = vmatprep.subr.bf16.mxu1 %v543_v38 }
  0xf4   : > { %884 = vmatpush3.bf16.msra.mxu1 %v543_v38 }
  0xf5   : > { %897 = vmatprep.subr.bf16.mxu1 %v967_v40 }
  0xf7   : > { %886 = vmatmul.mubr.msk.bf16.vlgmr.msra.gmra.mxu1 %vm579_vm1, %v936_v39 }
  0xf8   : > { %899 = vmatprep.mubr.msk.bf16.mxu1 %vm968_vm2, %v967_v40 }
 0x1b7   : > { %v887_v43 = vpop.f32.mrf.mxu1 }
 0x1b8   : > { %v629_v45 = vadd.f32 %v887_v43, %v562_v41 }
 0x1b9   : > { %v620_v44 = vpop.f32.mrf.mxu1 }
 0x1ba   : > { %v637_v51 = vmax.f32 %v629_v45, 0.0  ;;  %v621_v52 = vadd.f32 %v620_v44, %v552_v47 }
 0x1bb   : > { %v888_v46 = vpop.f32.mrf.mxu1 }
 0x1bc   : > { %v632_v48 = vadd.f32 %v888_v46, %v567_v42  ;;  %v635_v57 = vmax.f32 %v621_v52, 0.0 }
 0x1bd   : > { %v623_v50 = vpop.f32.mrf.mxu1 }
 0x1be   : > { %v638_v53 = vmax.f32 %v632_v48, 0.0  ;;  %v624_v54 = vadd.f32 %v623_v50, %v557_v49 }
 0x1c0   : > { %v642_v55 = vpack.c.bf16 %v638_v53, %v637_v51  ;;  %v636_v56 = vmax.f32 %v624_v54, 0.0 }
 0x1c2   : > { %890 = vmatpush3.bf16.msra.mxu0 %v642_v55  ;;  %v641_v58 = vpack.c.bf16 %v636_v56, %v635_v57 }
 0x1c3   : > { %891 = vmatprep.subr.bf16.mxu0 %v967_v40 }
 0x1c6   : > { %892 = vmatpush3.bf16.msra.mxu0 %v641_v58 }
 0x1c9   : > { %894 = vmatmul.mubr.msk.bf16.vlgmr.msra.gmra.mxu0 %vm579_vm1, %v937_v59 }
 0x289   : > { %v697_v60 = vpop.f32.mrf.mxu0 }
 0x28a   : > { %v698_v63 = vadd.f32 %v697_v60, %v648_v61 }
 0x28b   : > { %v895_v62 = vpop.f32.mrf.mxu0 }
 0x28c   : > { %v704_v4 = vmax.f32 %v698_v63, 0.0 }
 0x28d   : > { %v700_v1 = vpop.f32.mrf.mxu0 }
 0x28e   : > { %v701_v2 = vadd.f32 %v700_v1, %v653_v0 }
 0x28f   : > { %v896_v3 = vpop.f32.mrf.mxu0 }
 0x290   : > { %v705_v5 = vmax.f32 %v701_v2, 0.0 }
 0x292   : > { %v707_v6 = vpack.c.bf16 %v705_v5, %v704_v4 }
 0x294   : > { %898 = vmatpush3.bf16.msra.mxu1 %v707_v6 }
 0x297   : > { %900 = vmatmul.mubr.msk.bf16.vlgmr.msra.gmra.mxu1 %vm479_vm0, %v706_v7 }
 0x357   : > { %v751_v9 = vpop.f32.mrf.mxu1 }
 0x358   : > { %v752_v10 = vadd.f32 %v751_v9, %v712_v8 }
 0x359   : > { %v901_v11 = vpop.f32.mrf.mxu1 }
 0x35a   : > { %v757_v12 = vmax.f32 %v752_v10, 0.0 }
 0x35b   : > { %v754_v14 = vpop.f32.mrf.mxu1 }
 0x35c   : > { %v764_v16 = vmul.f32 %v762_v13, %v757_v12 }
 0x35d   : > { %v902_v17 = vpop.f32.mrf.mxu1 }
 0x35e   : > { %v765_v18 = vrot.slane %v764_v16, 4 }
 0x360   : > { %v766_v20 = vadd.f32 %v765_v18, %v764_v16 }
 0x362   : > { %v767_v21 = vrot.slane %v766_v20, 2 }
 0x364   : > { %v768_v23 = vadd.f32 %v767_v21, %v766_v20 }
 0x366   : > { %v769_v25 = vrot.slane %v768_v23, 1 }
 0x368   : > { %v770_v27 = vadd.f32 %v769_v25, %v768_v23 }
 0x36a   : > { %v781_v28 = vadd.f32 %v780_v26, %v770_v27 }
 0x36c   : > { %v782_v29 = vsub.f32 0.0, %v781_v28 }
 0x36e   : > { %v783_v30 = vmul.f32 1.442695, %v782_v29 }
 0x370   : > { %938 = vpow2.f32 %v783_v30 }
 0x37d   : > { %v939_v31 = vpop.eup %938 }
 0x37e   : > { %v785_v32 = vadd.f32 1.0, %v939_v31 }
 0x380   : > { %940 = vrcp.f32 %v785_v32 }
 0x38d   : > { %v941_v33 = vpop.eup %940 }
 0x38e   : > { %787 = vst [vmem:[%s431_s29] sm:$0x1] %v941_v33 }
 0x38f PF: > { %p20_p9 = scmp.ge.s32.totalorder %s1049_s22, 4   ;;  %s1158_s19 = smov %s960_s20 }
 0x390   : > { %s1159_s20 = smov %s1058_s25  ;;  %s1160_s21 = smov %s1049_s22 }
 0x391   :  { %22 = sbr.rel (!%p20_p9) target bundleno = 5 (0x5), region = 140 }

</bundles_post_ra>
